<compile_context>
chip_gen: v7x
topology: tpu7x:2x2x1
jax: 0.10.0
libtpu: 0.0.40
codegen_flags: <defaults>
</compile_context>

<pallas_src>
import jax
import jax.numpy as jnp
from jax import lax
from jax.experimental import pallas as pl
from jax.experimental.pallas import tpu as pltpu


# ---------------------------------------------------------------------------
# Pallas kernels
# ---------------------------------------------------------------------------

def _conv_stats_kernel(w_ref, x_ref, y_ref, s1_ref, s2_ref):
    # w_ref : (Cout, Tc)   packed per-phase weights
    # x_ref : (Tc, Lt)     im2col patches, spatial in the lane dim (lane-dense)
    # y_ref : (Cout, Lt)   conv output tile (channels in sublane, spatial in lane)
    # s1/s2 : (Cout, 1)    per-channel partial sum / sum-of-squares (BN stats)
    y = jnp.dot(w_ref[...], x_ref[...], preferred_element_type=jnp.float32)
    y_ref[...] = y
    s1_ref[...] = jnp.sum(y, axis=1, keepdims=True)        # lane-axis reduction
    s2_ref[...] = jnp.sum(y * y, axis=1, keepdims=True)


def _affine_relu_kernel(y_ref, sc_ref, sh_ref, o_ref):
    # out = relu(y * scale + shift); scale/shift are (Cout, 1), broadcast over lanes
    o_ref[...] = jnp.maximum(y_ref[...] * sc_ref[...] + sh_ref[...], 0.0)


# ---------------------------------------------------------------------------
# Static helpers (trace-time bookkeeping for the phase decomposition)
# ---------------------------------------------------------------------------

def _phase_taps(K, s, p, d):
    """For each output residue r in [0, s): list of (input_shift, kernel_tap)."""
    taps = [[] for _ in range(s)]
    for k in range(K):
        off = k * d - p
        r = off % s
        taps[r].append(((off - r) // s, k))
    return taps


def _pick_lane_tile(L, cap=2048):
    if L <= cap:
        return L
    for t in range(cap - cap % 128, 127, -128):
        if L % t == 0:
            return t
    # TODO(synk): huge, indivisible spatial extents fall back to one VMEM block.
    return L


# ---------------------------------------------------------------------------
# Wrapper
# ---------------------------------------------------------------------------

def conv2d_transpose_bn_relu(x_nchw, weight, bias, gamma, beta, *,
                             stride, padding, dilation=1, eps=1e-5, with_bn=True):
    """ConvTranspose2d -> BatchNorm2d (train-mode) -> ReLU.

    x_nchw : (N, Cin, H, W)
    weight : (Cin, Cout, K, K)  (PyTorch ConvTranspose2d layout)
    bias   : (Cout,)  — ignored when with_bn=True (exactly cancelled by the
             train-mode BN mean subtraction).
    """
    N, Cin, H, W = x_nchw.shape
    Cin_w, Cout, K, Kw = weight.shape
    assert K == Kw and Cin_w == Cin
    s, p, d = int(stride), int(padding), int(dilation)

    H_out = (H - 1) * s - 2 * p + d * (K - 1) + 1
    W_out = (W - 1) * s - 2 * p + d * (K - 1) + 1
    # TODO(synk): H_out % stride != 0 would need per-phase masking of BN stats.
    assert H_out % s == 0 and W_out % s == 0, "output extent must divide stride"
    Q, Qw = H_out // s, W_out // s
    n_phases = s * s

    taps_h = _phase_taps(K, s, p, d)
    taps_w = _phase_taps(K, s, p, d)
    tmax_h = max(len(t) for t in taps_h)
    tmax_w = max(len(t) for t in taps_w)
    T_max = max(1, tmax_h * tmax_w)
    Tc = T_max * Cin

    all_th = [t for lst in taps_h for (t, _) in lst]
    all_tw = [t for lst in taps_w for (t, _) in lst]
    pad_lo_h = max(0, max(all_th)); pad_hi_h = max(0, Q - min(all_th) - H)
    pad_lo_w = max(0, max(all_tw)); pad_hi_w = max(0, Qw - min(all_tw) - W)

    x_c = x_nchw.astype(jnp.float32)                                    # NCHW
    x_pad = jnp.pad(x_c, ((0, 0), (0, 0),
                          (pad_lo_h, pad_hi_h), (pad_lo_w, pad_hi_w)))
    w_t = jnp.transpose(weight.astype(jnp.float32), (2, 3, 1, 0))       # (K,K,Cout,Cin)

    # ---- wrapper-side im2col: per-phase patch slabs + packed per-phase weights
    phase_patches, phase_weights = [], []
    for rh in range(s):
        for rw in range(s):
            pats, wts = [], []
            for (th, kh) in taps_h[rh]:
                for (tw, kw) in taps_w[rw]:
                    a, b = pad_lo_h - th, pad_lo_w - tw
                    pats.append(x_pad[:, :, a:a + Q, b:b + Qw])         # (N,Cin,Q,Qw)
                    wts.append(w_t[kh, kw])                             # (Cout,Cin)
            n_t = len(pats)
            if n_t == 0:
                pat = jnp.zeros((N, T_max, Cin, Q, Qw), jnp.float32)
                wt = jnp.zeros((T_max, Cout, Cin), jnp.float32)
            else:
                pat = jnp.stack(pats, axis=1)                           # (N,n_t,Cin,Q,Qw)
                wt = jnp.stack(wts, axis=0)                             # (n_t,Cout,Cin)
                if n_t < T_max:
                    pat = jnp.pad(pat, ((0, 0), (0, T_max - n_t),
                                        (0, 0), (0, 0), (0, 0)))
                    wt = jnp.pad(wt, ((0, T_max - n_t), (0, 0), (0, 0)))
            phase_patches.append(pat.reshape(N, Tc, Q * Qw))
            phase_weights.append(jnp.transpose(wt, (1, 0, 2)).reshape(Cout, Tc))

    L = Q * Qw
    Xp = jnp.stack(phase_patches, axis=1)        # (N, n_phases, Tc, L)
    Wp = jnp.stack(phase_weights, axis=0)        # (n_phases, Cout, Tc)

    Lt = _pick_lane_tile(L)
    n_lt = L // Lt
    grid = (N, n_phases, n_lt)
    par3 = pltpu.CompilerParams(
        dimension_semantics=("parallel", "parallel", "parallel"))

    # ---- pass 1: per-phase matmul (lane-dense output) + fused BN partial stats
    y, s1, s2 = pl.pallas_call(
        _conv_stats_kernel,
        out_shape=(
            jax.ShapeDtypeStruct((N, n_phases, Cout, L), jnp.float32),
            jax.ShapeDtypeStruct((N, n_phases, n_lt, Cout, 1), jnp.float32),
            jax.ShapeDtypeStruct((N, n_phases, n_lt, Cout, 1), jnp.float32),
        ),
        grid=grid,
        in_specs=[
            pl.BlockSpec((None, Cout, Tc), lambda n, ph, l: (ph, 0, 0)),
            pl.BlockSpec((None, None, Tc, Lt), lambda n, ph, l: (n, ph, 0, l)),
        ],
        out_specs=(
            pl.BlockSpec((None, None, Cout, Lt), lambda n, ph, l: (n, ph, 0, l)),
            pl.BlockSpec((None, None, None, Cout, 1), lambda n, ph, l: (n, ph, l, 0, 0)),
            pl.BlockSpec((None, None, None, Cout, 1), lambda n, ph, l: (n, ph, l, 0, 0)),
        ),
        compiler_params=par3,
    )(Wp, Xp)

    # ---- fold BN into a per-channel affine (tiny O(Cout) math in the wrapper)
    if with_bn:
        cnt = float(N * n_phases * L)                         # == N * H_out * W_out
        mean = jnp.sum(s1, axis=(0, 1, 2)) / cnt              # (Cout, 1)
        var = jnp.sum(s2, axis=(0, 1, 2)) / cnt - mean * mean  # biased (train-mode)
        inv = lax.rsqrt(var + eps)
        scale = gamma.astype(jnp.float32).reshape(Cout, 1) * inv
        shift = beta.astype(jnp.float32).reshape(Cout, 1) - mean * scale
        # conv bias omitted: cancelled exactly by the BN mean subtraction.
    else:
        scale = jnp.ones((Cout, 1), jnp.float32)
        shift = bias.astype(jnp.float32).reshape(Cout, 1)

    # ---- pass 2: tiled affine (BN apply) + ReLU over the lane-dense slab ------
    z = pl.pallas_call(
        _affine_relu_kernel,
        out_shape=jax.ShapeDtypeStruct((N, n_phases, Cout, L), jnp.float32),
        grid=grid,
        in_specs=[
            pl.BlockSpec((None, None, Cout, Lt), lambda n, ph, l: (n, ph, 0, l)),
            pl.BlockSpec((Cout, 1), lambda n, ph, l: (0, 0)),
            pl.BlockSpec((Cout, 1), lambda n, ph, l: (0, 0)),
        ],
        out_specs=pl.BlockSpec((None, None, Cout, Lt), lambda n, ph, l: (n, ph, 0, l)),
        compiler_params=par3,
    )(y, scale, shift)

    # ---- interleave phases (pixel shuffle) straight back to NCHW --------------
    z = z.reshape(N, s, s, Cout, Q, Qw)
    z = jnp.transpose(z, (0, 3, 4, 1, 5, 2))       # (N, Cout, Q, rh, Qw, rw)
    out = z.reshape(N, Cout, H_out, W_out)
    return out.astype(x_nchw.dtype)


# ---------------------------------------------------------------------------
# Pure-JAX reference (independent construction: zero-dilated flipped conv)
# ---------------------------------------------------------------------------

def _reference(x_nchw, weight, bias, gamma, beta, *, stride, padding,
               dilation=1, eps=1e-5):
    s, p, d = stride, padding, dilation
    Cin, Cout, K, _ = weight.shape
    q = d * (K - 1) - p
    assert q >= 0
    x = jnp.transpose(x_nchw, (0, 2, 3, 1)).astype(jnp.float32)
    w_conv = jnp.transpose(weight[:, :, ::-1, ::-1], (2, 3, 0, 1)).astype(jnp.float32)
    y = lax.conv_general_dilated(
        x, w_conv, window_strides=(1, 1), padding=[(q, q), (q, q)],
        lhs_dilation=(s, s), rhs_dilation=(d, d),
        dimension_numbers=("NHWC", "HWIO", "NHWC"))
    y = y + bias.reshape(1, 1, 1, Cout)
    mean = jnp.mean(y, axis=(0, 1, 2), keepdims=True)
    var = jnp.mean((y - mean) ** 2, axis=(0, 1, 2), keepdims=True)
    out = (y - mean) * lax.rsqrt(var + eps) * gamma.reshape(1, 1, 1, Cout) \
        + beta.reshape(1, 1, 1, Cout)
    out = jnp.maximum(out, 0.0)
    return jnp.transpose(out, (0, 3, 1, 2))


if __name__ == "__main__":
    # module config: conv2DTransposeBatchNormRelu(in_channels=4, n_filters=8,
    #                k_size=2, stride=2, padding=0, bias=True, dilation=1, with_bn=True)
    N, Cin, H, W = 2, 4, 16, 16
    Cout, K, stride, padding, dilation = 8, 2, 2, 0, 1

    key = jax.random.PRNGKey(0)
    kx, kwt, kb, kg, kbe = jax.random.split(key, 5)
    x = jax.random.normal(kx, (N, Cin, H, W), jnp.float32)
    weight = 0.1 * jax.random.normal(kwt, (Cin, Cout, K, K), jnp.float32)
    bias = 0.1 * jax.random.normal(kb, (Cout,), jnp.float32)
    gamma = 1.0 + 0.1 * jax.random.normal(kg, (Cout,), jnp.float32)
    beta = 0.1 * jax.random.normal(kbe, (Cout,), jnp.float32)

    out = conv2d_transpose_bn_relu(x, weight, bias, gamma, beta,
                                   stride=stride, padding=padding, dilation=dilation)
    out = jax.block_until_ready(out)

    H_out = (H - 1) * stride - 2 * padding + dilation * (K - 1) + 1
    W_out = (W - 1) * stride - 2 * padding + dilation * (K - 1) + 1
    assert out.shape == (N, Cout, H_out, W_out), out.shape

    ref = _reference(x, weight, bias, gamma, beta,
                     stride=stride, padding=padding, dilation=dilation)
    if not jnp.allclose(out, ref, atol=1e-4, rtol=1e-4):
        err = float(jnp.max(jnp.abs(out - ref)))
        raise AssertionError(f"Pallas kernel mismatch vs JAX reference (max abs err {err})")

    print("KERNEL_OK")
</pallas_src>

<mosaic_0001>
module attributes {stable_mosaic.version = 11 : i64} {
  func.func @_conv_stats_kernel(%arg0: i32, %arg1: i32, %arg2: i32, %arg3: memref<1x8x4xf32, #tpu.memory_space<vmem>>, %arg4: memref<1x1x4x256xf32, #tpu.memory_space<vmem>>, %arg5: memref<1x1x8x256xf32, #tpu.memory_space<vmem>>, %arg6: memref<1x1x1x8x1xf32, #tpu.memory_space<vmem>>, %arg7: memref<1x1x1x8x1xf32, #tpu.memory_space<vmem>>) attributes {dimension_semantics = [#tpu.dimension_semantics<parallel>, #tpu.dimension_semantics<parallel>, #tpu.dimension_semantics<parallel>], iteration_bounds = array<i64: 2, 4, 1>, scalar_prefetch = 0 : i64, scratch_operands = 0 : i64, tpu.core_type = #tpu.core_type<tc>, window_params = [{transform_indices = @transform_0, window_bounds = array<i64: 1, 8, 4>}, {transform_indices = @transform_1, window_bounds = array<i64: 1, 1, 4, 256>}, {transform_indices = @transform_2, window_bounds = array<i64: 1, 1, 8, 256>}, {transform_indices = @transform_3, window_bounds = array<i64: 1, 1, 1, 8, 1>}, {transform_indices = @transform_4, window_bounds = array<i64: 1, 1, 1, 8, 1>}]} {
    %c0 = arith.constant 0 : index
    %c0_0 = arith.constant 0 : index
    %c0_1 = arith.constant 0 : index
    %0 = vector.load %arg3[%c0, %c0_0, %c0_1] : memref<1x8x4xf32, #tpu.memory_space<vmem>>, vector<1x8x4xf32>
    %1 = vector.shape_cast %0 : vector<1x8x4xf32> to vector<8x4xf32>
    %c0_2 = arith.constant 0 : index
    %c0_3 = arith.constant 0 : index
    %c0_4 = arith.constant 0 : index
    %c0_5 = arith.constant 0 : index
    %2 = vector.load %arg4[%c0_2, %c0_3, %c0_4, %c0_5] : memref<1x1x4x256xf32, #tpu.memory_space<vmem>>, vector<1x1x4x256xf32>
    %3 = vector.shape_cast %2 : vector<1x1x4x256xf32> to vector<4x256xf32>
    %cst = arith.constant dense<0.000000e+00> : vector<8x256xf32>
    %4 = tpu.matmul %1, %3, %cst {dimension_numbers = #tpu.dot_dimension_numbers<[1], [0], [0], [1], [0, 0, 1, 1], [], []>} : vector<8x4xf32>, vector<4x256xf32>, vector<8x256xf32> -> vector<8x256xf32>
    %c0_6 = arith.constant 0 : index
    %c0_7 = arith.constant 0 : index
    %c0_8 = arith.constant 0 : index
    %c0_9 = arith.constant 0 : index
    %5 = vector.load %arg5[%c0_6, %c0_7, %c0_8, %c0_9] : memref<1x1x8x256xf32, #tpu.memory_space<vmem>>, vector<1x1x8x256xf32>
    %6 = vector.shape_cast %5 : vector<1x1x8x256xf32> to vector<8x256xf32>
    %7 = vector.shape_cast %4 : vector<8x256xf32> to vector<1x1x8x256xf32>
    tpu.vector_store %arg5[%c0_6, %c0_7, %c0_8, %c0_9], %7 {strides = array<i32>} : memref<1x1x8x256xf32, #tpu.memory_space<vmem>>, vector<1x1x8x256xf32>,
    %cst_10 = arith.constant dense<0.000000e+00> : vector<8xf32>
    %8 = vector.multi_reduction <add>, %4, %cst_10 [1] : vector<8x256xf32> to vector<8xf32>
    %9 = vector.shape_cast %8 : vector<8xf32> to vector<8x1xf32>
    %c0_11 = arith.constant 0 : index
    %c0_12 = arith.constant 0 : index
    %c0_13 = arith.constant 0 : index
    %c0_14 = arith.constant 0 : index
    %c0_15 = arith.constant 0 : index
    %10 = vector.load %arg6[%c0_11, %c0_12, %c0_13, %c0_14, %c0_15] : memref<1x1x1x8x1xf32, #tpu.memory_space<vmem>>, vector<1x1x1x8x1xf32>
    %11 = vector.shape_cast %10 : vector<1x1x1x8x1xf32> to vector<8x1xf32>
    %12 = vector.shape_cast %9 : vector<8x1xf32> to vector<1x1x1x8x1xf32>
    tpu.vector_store %arg6[%c0_11, %c0_12, %c0_13, %c0_14, %c0_15], %12 {strides = array<i32>} : memref<1x1x1x8x1xf32, #tpu.memory_space<vmem>>, vector<1x1x1x8x1xf32>,
    %13 = arith.mulf %4, %4 : vector<8x256xf32>
    %cst_16 = arith.constant dense<0.000000e+00> : vector<8xf32>
    %14 = vector.multi_reduction <add>, %13, %cst_16 [1] : vector<8x256xf32> to vector<8xf32>
    %15 = vector.shape_cast %14 : vector<8xf32> to vector<8x1xf32>
    %c0_17 = arith.constant 0 : index
    %c0_18 = arith.constant 0 : index
    %c0_19 = arith.constant 0 : index
    %c0_20 = arith.constant 0 : index
    %c0_21 = arith.constant 0 : index
    %16 = vector.load %arg7[%c0_17, %c0_18, %c0_19, %c0_20, %c0_21] : memref<1x1x1x8x1xf32, #tpu.memory_space<vmem>>, vector<1x1x1x8x1xf32>
    %17 = vector.shape_cast %16 : vector<1x1x1x8x1xf32> to vector<8x1xf32>
    %18 = vector.shape_cast %15 : vector<8x1xf32> to vector<1x1x1x8x1xf32>
    tpu.vector_store %arg7[%c0_17, %c0_18, %c0_19, %c0_20, %c0_21], %18 {strides = array<i32>} : memref<1x1x1x8x1xf32, #tpu.memory_space<vmem>>, vector<1x1x1x8x1xf32>,
    return
  }
  func.func @transform_0(%arg0: i32, %arg1: i32, %arg2: i32) -> (i32, i32, i32) {
    %c0_i32 = arith.constant 0 : i32
    %c0_i32_0 = arith.constant 0 : i32
    %c0_i32_1 = arith.constant 0 : i32
    return %arg1, %c0_i32, %c0_i32_0 : i32, i32, i32
  }
  func.func @transform_1(%arg0: i32, %arg1: i32, %arg2: i32) -> (i32, i32, i32, i32) {
    %c0_i32 = arith.constant 0 : i32
    %c0_i32_0 = arith.constant 0 : i32
    return %arg0, %arg1, %c0_i32, %arg2 : i32, i32, i32, i32
  }
  func.func @transform_2(%arg0: i32, %arg1: i32, %arg2: i32) -> (i32, i32, i32, i32) {
    %c0_i32 = arith.constant 0 : i32
    %c0_i32_0 = arith.constant 0 : i32
    return %arg0, %arg1, %c0_i32, %arg2 : i32, i32, i32, i32
  }
  func.func @transform_3(%arg0: i32, %arg1: i32, %arg2: i32) -> (i32, i32, i32, i32, i32) {
    %c0_i32 = arith.constant 0 : i32
    %c0_i32_0 = arith.constant 0 : i32
    %c0_i32_1 = arith.constant 0 : i32
    return %arg0, %arg1, %arg2, %c0_i32, %c0_i32_0 : i32, i32, i32, i32, i32
  }
  func.func @transform_4(%arg0: i32, %arg1: i32, %arg2: i32) -> (i32, i32, i32, i32, i32) {
    %c0_i32 = arith.constant 0 : i32
    %c0_i32_0 = arith.constant 0 : i32
    %c0_i32_1 = arith.constant 0 : i32
    return %arg0, %arg1, %arg2, %c0_i32, %c0_i32_0 : i32, i32, i32, i32, i32
  }
}

</mosaic_0001>

<bundles_post_ra>
// kernel: tpu_custom_call.1
= control target key start
LH: loop header
LB: loop body
LE: loop exit
PB: predicated region body
PF: predicated region fallthrough
CT: control target
= control target key end

     0   :  { %10 = vsyncpa [#allocation3], 0  ;;  %s1125_s0 = inlined_call_operand.vmem [shape: f32[4,8,4], index: 0, kind: input, shape index: {}]   ;;  %s1126_s1 = inlined_call_operand.hbm [shape: f32[2,4,4,256], index: 1, kind: input, shape index: {}]   ;;  %s1127_s2 = inlined_call_operand.hbm [shape: f32[2,4,8,256], index: 2, kind: output, shape index: {0}]   ;;  %s1128_s3 = inlined_call_operand.vmem [shape: f32[2,4,1,8,1], index: 3, kind: output, shape index: {1}]   ;;  %s1129_s4 = inlined_call_operand.vmem [shape: f32[2,4,1,8,1], index: 4, kind: output, shape index: {2}]  }
   0x1   :  { %12 = vsyncpa [#allocation3 + $0x1], 0 }
   0x2   :  { %13 = vsyncpa [#allocation4], 0 }
   0x3   :  { %15 = vsyncpa [#allocation4 + $0x1], 0  ;;  %s920_s15 = smov 0   ;;  %s922_s16 = smov 0  }
   0x4   :  { %s924_s17 = smov 0   ;;  %s926_s18 = smov 0  }
   0x5   :  { %s928_s19 = smov 0   ;;  %s930_s20 = smov 0  }
   0x6   :  { %s932_s21 = smov 0   ;;  %s934_s22 = smov 0  }
   0x7 LB: > { %s657_s23 = sadd.s32 4294967295, %s890_s22   ;;  %s658_s24 = sadd.s32 4294967294, %s890_s22   ;;  %s890_s22 = sphi %s934_s22, %s21_s22   ;;  %s886_s21 = sphi %s932_s21, %s1149_s21   ;;  %s882_s20 = sphi %s930_s20, %s1148_s20   ;;  %s878_s19 = sphi %s928_s19, %s1147_s19   ;;  %s874_s18 = sphi %s926_s18, %s1146_s18   ;;  %s870_s17 = sphi %s924_s17, %s1145_s17   ;;  %s866_s16 = sphi %s922_s16, %s1144_s16   ;;  %s862_s15 = sphi %s920_s15, %s1143_s15  }
   0x8   : > { %s36_s25 = sadd.s32 1, %s882_s20  ;;  %s40_s26 = sadd.s32 1, %s886_s21 }
   0x9   : > { %p38_p0 = scmp.ge.s32.totalorder %s36_s25, 4  ;;  %s77_s27 = sadd.s32 1, %s870_s17 }
   0xa   : > { %p84_p1 = scmp.ne.s32.totalorder %s870_s17, %s866_s16  ;;  %p85_p2 = scmp.eq.s32.totalorder %s890_s22, 0 }
   0xb   : > { %s1151_s25 = smov (%p38_p0, %s36_s25), 0  ;;  %s1153_s26 = smov (!%p38_p0, %s40_s26), %s886_s21 }
   0xc   : > { %s71_s28 = ssub.s32 %s882_s20, %s1151_s25  ;;  %p973_p3 = por %p85_p2, %p84_p1 }
   0xd   : > { %p42_p4 = scmp.ge.s32.totalorder %s1153_s26, 2  ;;  %p90_p5 = scmp.ne.s32.totalorder %s866_s16, %s862_s15 }
   0xe   : > { %p91_p6 = scmp.eq.s32.totalorder %s657_s23, 0  ;;  %p118_p7 = scmp.eq.s32.totalorder %s657_s23, 7 }
   0xf   : > { %s1155_s26 = smov (%p42_p4, %s1153_s26), 0  ;;  %p124_p10 = scmp.eq.s32.totalorder %s658_s24, 7 }
  0x10   : > { %1133 = sst [smem:[#allocation8_spill]] %s1155_s26  ;;  %p981_p8 = por %p91_p6, %p90_p5 }
  0x11   : > { %p985_p9 = por %p118_p7, %p84_p1  ;;  %s70_s6 = ssub.s32 %s886_s21, %s1155_s26 }
  0x12   : > { %s72_s7 = sor.u32 %s71_s28, %s70_s6  ;;  %p991_p12 = por %p124_p10, %p90_p5 }
  0x13   : > { %s1135_s5 = scalar_select %p985_p9, 1, 0 }
  0x14   : > { %p75_p11 = scmp.eq.s32.totalorder %s72_s7, 0  ;;  %p694_p13 = scmp.lt.s32.totalorder %s890_s22, 8 }
  0x15   : > { %s1136_s8 = scalar_select %p991_p12, 1, 0 }
  0x16   : > { %s211_s9 = sand.u32 1, %s870_s17   ;;  %s662_s12 = sshll.u32 %s882_s20, 1 }
  0x17   : > { %s998_s10 = scalar_select %p75_p11, %s870_s17, %s77_s27  }
  0x18   : > { %s661_s11 = sshll.u32 %s211_s9, 3  ;;  %s663_s13 = sshll.u32 %s886_s21, 3 }
  0x19   : > { %s215_s14 = scalar_lea.vmem [#allocation2], %s661_s11  ;;  %s223_s26 = sadd.s32 %s663_s13, %s662_s12 }
  0x1a   : > { %s227_s23 = sshll.u32 %s215_s14, 4  ;;  %s664_s24 = sshll.u32 %s223_s26, 6  ;;  %s1002_s23 = int_to_ptr.vmem [resolvable:$true] %s227_s23 }
  0x1b   : > { %p1006_p0 = pnand %p694_p13, %p973_p3  ;;  %s1013_s27 = scalar_lea.hbm %s1126_s1, %s664_s24 }
  0x1c   : > { %s212_s11 = scalar_lea.sflag [#allocation3], %s211_s9  ;;  %s762_s26 = scalar_lea.hbm %s1013_s27, 128 }
  0x1d   : > { %p763_p4 = scmp.ne.s32.totalorder %s1013_s27, %s762_s26  ;;  %p764_p3 = pneg %p1006_p0 }
  0x1e   : > { %s767_s13 = scalar_lea.hbm %s1126_s1, 1024  ;;  %p768_p7 = scmp.lt.u32.totalorder %s1013_s27, %s1126_s1 }
  0x1f   : > { %p765_p5 = pnand %p764_p3, %p763_p4  ;;  %p769_p10 = scmp.lt.u32.totalorder %s767_s13, %s762_s26 }
  0x20   : > { %p771_p13 = scmp.lt.u32.totalorder %s762_s26, %s1013_s27 }
  0x21   : > { %p766_p6 = pneg %p765_p5  ;;  %p770_p11 = por %p769_p10, %p768_p7 }
  0x23   : > { %p772_p1 = por %p771_p13, %p770_p11 }
  0x25   : > { %p773_p2 = pnand %p772_p1, %p766_p6 }
  0x27   : > { %776 = shalt.err (!%p773_p2)
}
  0x28   : > { %s777_s9 = scalar_lea.vmem %s1002_s23, 128  ;;  %s892_s6 = smov [#allocation2]  }
  0x29   : > { %p778_p4 = scmp.ne.s32.totalorder %s1002_s23, %s777_s9  ;;  %s782_s7 = sshll.u32 %s892_s6, 4  ;;  %s783_s7 = int_to_ptr.vmem [resolvable:$false] %s782_s7 }
  0x2a   : > { %s784_s29 = scalar_lea.vmem %s783_s7, 256  ;;  %p785_p9 = scmp.lt.s32.totalorder %s1002_s23, %s783_s7 }
  0x2b   : > { %p780_p5 = pnand %p778_p4, %p764_p3  ;;  %p786_p7 = scmp.lt.s32.totalorder %s784_s29, %s777_s9 }
  0x2d   : > { %p781_p12 = pneg %p780_p5  ;;  %p787_p10 = por %p786_p7, %p785_p9 }
  0x2f   : > { %p788_p11 = pnand %p787_p10, %p781_p12 }
  0x31   : > { %791 = shalt.err (!%p788_p11)
}
  0x32   : > { %689 = dma.hbm_to_vmem [thread:$0]  (!%p1006_p0), %s1013_s27, 128, %s1002_s23, %s212_s11  }
  0x33   : > { %p1138_p1 = scmp.lt.s32.totalorder %s890_s22, 9  ;;  %p1139_p2 = scmp.ge.s32.totalorder %s890_s22, 1 }
  0x35   : > { %p233_p3 = pnand %p1139_p2, %p1138_p1 }
  0x36   : > { %s1047_s26 = sand.u32 (!%p233_p3), 1, %s866_s16  }
  0x37   : > { %236 = sbr.rel (%p233_p3) target bundleno = 432 (0x1b0), region = 28  ;;  %s666_s12 = sshll.u32 (!%p233_p3), %s1047_s26, 3 }
  0x38   : > { %s239_s13 = scalar_lea.sflag (!%p233_p3), [#allocation3], %s1047_s26  ;;  %s242_s14 = scalar_lea.vmem (!%p233_p3), [#allocation2], %s666_s12 }
  0x3e   : > { %853 = dma.done.wait (%p981_p8), %s239_s13, 128  }
  0x3f   : > { %855 = vsyncadd (%p981_p8), %s239_s13, 4294967168  ;;  %p293_p9 = scmp.lt.s32.totalorder %s874_s18, 3  ;;  %v893_v0 = vmov 0.0   ;;  %v322_v1 = vld [vmem:[%s242_s14] sm:$0xff]  ;;  %vm329_vm0 = vcmask 1043456   ;;  %vm325_vm1 = vcmask 31744  }
  0x40   : > { %398 = vmatprep.mubr.f32.mxu0 %v893_v0  ;;  %v324_v2 = vcombine.high %v322_v1, %v322_v1  ;;  %s667_s30 = sshll.u32 %s1047_s26, 4  ;;  %s677_s7 = sshll.u32 %s874_s18, 1 }
  0x41   : > { %s1057_s23 = scalar_select %p293_p9, %s874_s18, 3 }
  0x42   : > { %673 = vmatprep.subr.msk.mxu0 %vm329_vm0, %v324_v2  ;;  %s266_s9 = scalar_lea.vmem [#allocation5], %s667_s30  ;;  %s678_s29 = sshll.u32 %s878_s19, 3 }
  0x43   : > { %s668_s28 = sshll.u32 %s1057_s23, 3  ;;  %674 = vmatpush1.msk.msra.mxu0 %vm329_vm0, %v322_v1  ;;  %s459_s6 = sshll.u32 %s266_s9, 4  ;;  %s1066_s6 = int_to_ptr.vmem [resolvable:$true] %s459_s6 }
  0x44   : > { %s296_s24 = scalar_lea.vmem %s1125_s0, %s668_s28  ;;  %s455_s12 = sadd.s32 %s678_s29, %s677_s7 }
  0x45   : > { %v321_v3 = vld [vmem:[%s296_s24] sm:$0xff]  ;;  %s679_s13 = sshll.u32 %s455_s12, 7  ;;  %s419_s11 = scalar_lea.sflag [#allocation4], %s1047_s26 }
  0x46   : > { %675 = vmatmul.mubr.msk.f32.vlgmr.msra.gmra.mrb[0].mxu0 %vm325_vm1, %v321_v3  ;;  %s457_s27 = scalar_lea.hbm %s1127_s2, %s679_s13  ;;  %s792_s24 = scalar_lea.vmem %s1066_s6, 256 }
  0x47   : > { %p793_p8 = scmp.ne.s32.totalorder %s1066_s6, %s792_s24  ;;  %p1140_p12 = scmp.ne.s32.totalorder %s1135_s5, 0 }
  0x48   : > { %s894_s30 = smov [#allocation5]  }
  0x49   : > { %p794_p0 = pnand %p793_p8, %p1140_p12  ;;  %s796_s18 = sshll.u32 %s894_s30, 4  ;;  %s797_s18 = int_to_ptr.vmem [resolvable:$false] %s796_s18 }
  0x4a   : > { %p799_p13 = scmp.lt.s32.totalorder %s1066_s6, %s797_s18 }
  0x4b   : > { %p795_p6 = pneg %p794_p0 }
 0x119   : > { %v400_v4 = vpop.f32.mrb[0].mxu0 }
 0x11a   : > { %405 = vst [vmem:[%s266_s9] sm:$0xff] %v400_v4  ;;  %v402_v5 = vpop.f32.mrb[1].mxu0  ;;  %v412_v6 = vmul.f32 %v400_v4, %v400_v4 }
 0x11b   : > { %406 = vst [vmem:[%s266_s9 + $0x8] sm:$0xff] %v402_v5  ;;  %v413_v7 = vmul.f32 %v402_v5, %v402_v5  ;;  %v407_v8 = vadd.f32 %v402_v5, %v400_v4  ;;  %s798_s9 = scalar_lea.vmem %s797_s18, 512 }
 0x11c   : > { %p800_p4 = scmp.lt.s32.totalorder %s798_s9, %s792_s24 }
 0x11d   : > { %408 = vadd.xlane.f32.xlu0 %v407_v8  ;;  %v414_v9 = vadd.f32 %v413_v7, %v412_v6 }
 0x11e   : > { %p801_p5 = por %p800_p4, %p799_p13 }
 0x120   : > { %p802_p7 = pnand %p801_p5, %p795_p6 }
 0x121   : > { %415 = vadd.xlane.f32.xlu0 %v414_v9 }
 0x122   : > { %805 = shalt.err (!%p802_p7)
}
 0x123   : > { %s806_s7 = scalar_lea.hbm %s457_s27, 256  ;;  %s810_s12 = scalar_lea.hbm %s1127_s2, 2048 }
 0x124   : > { %p807_p10 = scmp.ne.s32.totalorder %s457_s27, %s806_s7  ;;  %p811_p2 = scmp.lt.u32.totalorder %s457_s27, %s1127_s2 }
 0x125   : > { %p812_p3 = scmp.lt.u32.totalorder %s810_s12, %s806_s7  ;;  %p814_p8 = scmp.lt.u32.totalorder %s806_s7, %s457_s27 }
 0x126   : > { %p808_p11 = pnand %p807_p10, %p1140_p12 }
 0x127   : > { %p813_p9 = por %p812_p3, %p811_p2 }
 0x128   : > { %p809_p1 = pneg %p808_p11 }
 0x129   : > { %p815_p0 = por %p814_p8, %p813_p9 }
 0x12b   : > { %p816_p6 = pnand %p815_p0, %p809_p1 }
 0x12d   : > { %819 = shalt.err (!%p816_p6)
}
 0x12e   : > { %684 = dma.vmem_to_hbm [thread:$0]  (%p1140_p12), %s1066_s6, 256, %s457_s27, %s419_s11   ;;  %vm410_vm2 = vcmask 7168  }
 0x12f   : > { %p299_p13 = scmp.lt.s32.totalorder %s878_s19, 1 }
 0x131   : > { %s1157_s19 = smov (!%p299_p13, %s878_s19), 1 }
 0x132   : > { %s669_s28 = sshll.u32 %s1157_s19, 2 }
 0x133   : > { %s307_s24 = sadd.s32 %s669_s28, %s1057_s23 }
 0x134   : > { %s670_s30 = sshll.u32 %s307_s24, 3 }
 0x135   : > { %s309_s26 = scalar_lea.vmem %s1128_s3, %s670_s30  ;;  %s320_s5 = scalar_lea.vmem %s1129_s4, %s670_s30 }
 0x1aa   : > { %v409_v10 = vpop.xlane.xlu0 %408 }
 0x1ab   : > { %411 = vst.msk [vmem:[%s309_s26] sm:$0xff] %vm410_vm2, %v409_v10 }
 0x1ae   : > { %v416_v11 = vpop.xlane.xlu0 %415 }
 0x1af   : > { %417 = vst.msk [vmem:[%s320_s5] sm:$0xff] %vm410_vm2, %v416_v11 }
 0x1b0 PF: > { %p695_p12 = scmp.ge.s32.totalorder %s890_s22, 2  ;;  %s477_s19 = sand.u32 1, %s862_s15  }
 0x1b1   : > { %p1141_p4 = scmp.ne.s32.totalorder %s1136_s8, 0  ;;  %s478_s23 = scalar_lea.sflag [#allocation4], %s477_s19 }
 0x1b3   : > { %p691_p5 = pnand %p695_p12, %p1141_p4 }
 0x1b5   : > { %857 = dma.done.wait (!%p691_p5), %s478_s23, 256  }
 0x1b6   : > { %859 = vsyncadd (!%p691_p5), %s478_s23, 4294967040  ;;  %s21_s22 = sadd.s32 1, %s890_s22   ;;  %s1142_s6 = sld [smem:[#allocation8_spill]] }
 0x1b7   : > { %p18_p7 = scmp.ge.s32.totalorder %s21_s22, 10   ;;  %s1143_s15 = smov %s866_s16 }
 0x1b8   : > { %s1144_s16 = smov %s870_s17  ;;  %s1145_s17 = smov %s998_s10 }
 0x1b9   : > { %s1146_s18 = smov %s882_s20  ;;  %s1147_s19 = smov %s886_s21 }
 0x1ba   : > { %s1148_s20 = smov %s1151_s25  ;;  %20 = sbr.rel (!%p18_p7) target bundleno = 7 (0x7), region = 100 }
 0x1bc   : > { %s1149_s21 = smov %s1142_s6 }
 0x1c1   :  { %511 = vsyncpa [#allocation3], 1 }
 0x1c2   :  { %513 = vsyncpa [#allocation3 + $0x1], 1 }
 0x1c3   :  { %514 = vsyncpa [#allocation4], 1 }
 0x1c4   :  { %516 = vsyncpa [#allocation4 + $0x1], 1 }

</bundles_post_ra>
